<compile_context>
chip_gen: v7x
topology: tpu7x:2x2x1
jax: 0.10.0
libtpu: 0.0.40
codegen_flags: <defaults>
</compile_context>

<pallas_src>
import jax
import jax.numpy as jnp
from jax.experimental import pallas as pl
from jax.experimental.pallas import tpu as pltpu

IGNORE_INDEX = 255


def _bilinear_weight_matrix(out_size, in_size):
    """Dense (out_size, in_size) bilinear interpolation matrix, align_corners=False."""
    scale = in_size / out_size
    dst = jnp.arange(out_size, dtype=jnp.float32)
    src = (dst + 0.5) * scale - 0.5
    src = jnp.maximum(src, 0.0)
    i0 = jnp.clip(jnp.floor(src).astype(jnp.int32), 0, in_size - 1)
    i1 = jnp.clip(i0 + 1, 0, in_size - 1)
    w1 = src - i0.astype(jnp.float32)
    w0 = 1.0 - w1
    rows = jnp.arange(out_size)
    Wm = jnp.zeros((out_size, in_size), jnp.float32)
    Wm = Wm.at[rows, i0].add(w0)
    Wm = Wm.at[rows, i1].add(w1)
    return Wm


def _make_kernel(block_n, c_pad, ignore_index, exp_dtype):
    Cp = c_pad

    def kernel(wk_ref, preds_ref, tgt_ref, out_ref, ups_ref):
        # One stacked bf16 MXU matmul upsamples every channel of every image in
        # the block: (block_n*Cp, hw_in) @ (hw_in, HW) -> f32 (block_n*Cp, HW).
        ups_ref[...] = jnp.dot(preds_ref[...], wk_ref[...],
                               preferred_element_type=jnp.float32)
        HW = ups_ref.shape[-1]
        ch_iota = jax.lax.broadcasted_iota(jnp.int32, (Cp, 1), 0)

        def body(b, carry):
            loss_acc, cnt_acc = carry
            row = pl.multiple_of(b * Cp, Cp)
            logits = ups_ref[pl.ds(row, Cp), :]                 # (Cp, HW) f32
            tgt = tgt_ref[b]                                    # (1, HW) int32

            # numerically-stable log-softmax over the channel (sublane) axis
            m = jnp.max(logits, axis=0, keepdims=True)                         # (1, HW)
            p = jnp.exp((logits - m).astype(exp_dtype))                        # (Cp, HW)
            sumexp = jnp.sum(p, axis=0, keepdims=True, dtype=jnp.float32)      # (1, HW)
            lse = m + jnp.log(sumexp)                                          # (1, HW)

            # target logit via one broadcasted compare against the channel iota
            tgt_logit = jnp.sum(jnp.where(tgt == ch_iota, logits, 0.0),
                                axis=0, keepdims=True)                         # (1, HW)

            valid = (tgt != ignore_index).astype(jnp.float32)                  # (1, HW)
            return (loss_acc + valid * (lse - tgt_logit), cnt_acc + valid)

        init = (jnp.zeros((1, HW), jnp.float32), jnp.zeros((1, HW), jnp.float32))
        loss_acc, cnt_acc = jax.lax.fori_loop(0, block_n, body, init, unroll=True)

        # Merge the two scalar partials into one lane-contiguous (1, 2) store.
        out_ref[0] = jnp.concatenate(
            [jnp.sum(loss_acc, keepdims=True), jnp.sum(cnt_acc, keepdims=True)],
            axis=-1)

    return kernel


def criterion_cross_entropy(preds, target, ignore_index=IGNORE_INDEX):
    N, C, h_in, w_in = preds.shape
    Nt, H, W = target.shape
    assert N == Nt
    hw_in, HW = h_in * w_in, H * W

    # ---------- hardware-aware sizing ------------------------------------
    try:
        vmem_cap = int(pltpu.get_tpu_info().vmem_capacity_bytes)
    except Exception:
        vmem_cap = 64 * 1024 * 1024                 # conservative (v7x physical)
    try:
        kind = jax.devices()[0].device_kind.lower()
    except Exception:
        kind = ""
    # bf16 EUP exists on v6e/v7x; keep f32 exp on v5e and older.
    exp_dtype = jnp.bfloat16 if ("v6" in kind or "v7" in kind) else jnp.float32

    # Pad the class axis to a bf16-sublane multiple (16). Padded channels hold
    # a large negative constant; bilinear weights sum to 1, so after upsample
    # they stay ~-1e9 and never win the max / contribute to sum-exp / match a
    # valid target index (< C or == ignore_index).
    Cp = max(16, -(-C // 16) * 16)

    # Separable bilinear weights fused into one kron matrix -> whole upsample
    # is a single lane-dense matmul per block (right choice while hw_in small).
    wh = _bilinear_weight_matrix(H, h_in)
    ww = _bilinear_weight_matrix(W, w_in)
    wk_t = jnp.kron(wh, ww).T.astype(jnp.bfloat16)              # (hw_in, HW)

    if Cp > C:
        pad = jnp.full((N, Cp - C, h_in, w_in), -1e9, preds.dtype)
        preds = jnp.concatenate([preds, pad], axis=1)
    preds2d = preds.reshape(N * Cp, hw_in).astype(jnp.bfloat16)  # (N*Cp, hw_in)
    tgt3d = target.reshape(N, 1, HW).astype(jnp.int32)           # (N, 1, HW)

    # Per-grid-step VMEM working set: single-buffered kron weight, double-
    # buffered preds/target blocks, f32 upsample scratch, temporary headroom.
    w_bytes = hw_in * HW * 2

    def step_bytes(bn):
        return (w_bytes
                + 2 * bn * Cp * hw_in * 2          # preds block  x2 pipeline bufs
                + 2 * bn * HW * 4                  # target block x2 pipeline bufs
                + bn * Cp * HW * 4                 # upsample scratch (f32)
                + 4 * Cp * HW * 4)                 # per-image temporaries

    budget = max(16 << 20, vmem_cap // 2)
    # Keep >=2 grid steps when N>=2 so the ("parallel",) axis can feed both
    # TensorCores on v7x; also cap the in-kernel unroll length.
    max_bn = min(16, N if N < 2 else max(1, N // 2))
    block_n = 1
    for bn in range(1, max_bn + 1):
        if N % bn == 0 and step_bytes(bn) <= budget:
            block_n = bn
    num_blocks = N // block_n
    vmem_limit = int(min(vmem_cap * 3 // 4,
                         max(32 << 20, 2 * step_bytes(block_n))))

    kernel = _make_kernel(block_n, Cp, ignore_index, exp_dtype)

    # Constant-index kron weight needs only one pipeline buffer.
    try:
        wk_spec = pl.BlockSpec((hw_in, HW), lambda n: (0, 0),
                               pipeline_mode=pl.Buffered(1))
    except TypeError:  # older BlockSpec signature without pipeline_mode
        wk_spec = pl.BlockSpec((hw_in, HW), lambda n: (0, 0))

    out = pl.pallas_call(
        kernel,
        out_shape=jax.ShapeDtypeStruct((num_blocks, 1, 2), jnp.float32),
        grid_spec=pltpu.PrefetchScalarGridSpec(
            num_scalar_prefetch=0,
            grid=(num_blocks,),
            in_specs=[
                wk_spec,                                                  # kron weights
                pl.BlockSpec((block_n * Cp, hw_in), lambda n: (n, 0)),    # logits block
                pl.BlockSpec((block_n, 1, HW), lambda n: (n, 0, 0)),      # target block
            ],
            out_specs=pl.BlockSpec((1, 1, 2), lambda n: (n, 0, 0)),
            scratch_shapes=[pltpu.VMEM((block_n * Cp, HW), jnp.float32)],
        ),
        compiler_params=pltpu.CompilerParams(
            dimension_semantics=("parallel",),
            vmem_limit_bytes=vmem_limit),
    )(wk_t, preds2d, tgt3d)

    # Tiny epilogue in plain JAX: masked mean over non-ignored pixels
    # (CrossEntropyLoss default reduction; an all-ignored batch gives NaN,
    # matching PyTorch behaviour).
    return jnp.sum(out[:, 0, 0]) / jnp.sum(out[:, 0, 1])


class CriterionCrossEntropy:
    """JAX/Pallas equivalent of the PyTorch CriterionCrossEntropy module (no params)."""

    def __init__(self, ignore_index=IGNORE_INDEX):
        self.ignore_index = ignore_index

    def __call__(self, preds, target):
        return criterion_cross_entropy(preds, target, self.ignore_index)


def _reference_loss(preds, target, ignore_index=IGNORE_INDEX):
    """Pure-JAX f32 reference with identical bilinear/CE math."""
    N, C, h_in, w_in = preds.shape
    _, H, W = target.shape
    wh = _bilinear_weight_matrix(H, h_in)
    ww = _bilinear_weight_matrix(W, w_in)
    up = jnp.einsum('hy,ncyx,wx->nchw', wh, preds, ww)
    logits = up.transpose(0, 2, 3, 1).reshape(-1, C)
    t = target.reshape(-1)
    lse = jax.scipy.special.logsumexp(logits, axis=-1)
    tl = jnp.take_along_axis(logits, jnp.clip(t, 0, C - 1)[:, None], axis=-1)[:, 0]
    valid = t != ignore_index
    per = jnp.where(valid, lse - tl, 0.0)
    return jnp.sum(per) / jnp.sum(valid)


if __name__ == "__main__":
    key = jax.random.PRNGKey(0)
    kp, kt, km = jax.random.split(key, 3)

    N, C, h_in, w_in = 2, 4, 8, 8    # low-res logits
    H, W = 16, 16                    # target / upsampled resolution

    preds = jax.random.normal(kp, (N, C, h_in, w_in), jnp.float32)
    target = jax.random.randint(kt, (N, H, W), 0, C).astype(jnp.int32)
    ignore_mask = jax.random.uniform(km, (N, H, W)) < 0.1
    target = jnp.where(ignore_mask, IGNORE_INDEX, target)

    crit = CriterionCrossEntropy(ignore_index=IGNORE_INDEX)
    loss = crit(preds, target)
    jax.block_until_ready(loss)

    ref = _reference_loss(preds, target)
    # bf16 MXU operands (and bf16 exp on v6e/v7x) introduce ~2^-8 relative
    # error vs. the f32 reference; loosen the check accordingly.
    assert abs(float(loss) - float(ref)) < 2e-2, (float(loss), float(ref))

    print("KERNEL_OK")
</pallas_src>

<mosaic_0001>
module attributes {stable_mosaic.version = 11 : i64} {
  func.func @kernel(%arg0: i32, %arg1: memref<64x256xbf16, #tpu.memory_space<vmem>>, %arg2: memref<16x64xbf16, #tpu.memory_space<vmem>>, %arg3: memref<1x1x256xi32, #tpu.memory_space<vmem>>, %arg4: memref<1x1x2xf32, #tpu.memory_space<vmem>>, %arg5: memref<16x256xf32, #tpu.memory_space<vmem>>) attributes {dimension_semantics = [#tpu.dimension_semantics<parallel>], iteration_bounds = array<i64: 2>, scalar_prefetch = 0 : i64, scratch_operands = 1 : i64, tpu.core_type = #tpu.core_type<tc>, window_params = [{pipeline_mode = #tpu.pipeline_mode<synchronous>, transform_indices = @transform_0, window_bounds = array<i64: 64, 256>}, {transform_indices = @transform_1, window_bounds = array<i64: 16, 64>}, {transform_indices = @transform_2, window_bounds = array<i64: 1, 1, 256>}, {transform_indices = @transform_3, window_bounds = array<i64: 1, 1, 2>}]} {
    %c0 = arith.constant 0 : index
    %c0_0 = arith.constant 0 : index
    %0 = vector.load %arg2[%c0, %c0_0] : memref<16x64xbf16, #tpu.memory_space<vmem>>, vector<16x64xbf16>
    %c0_1 = arith.constant 0 : index
    %c0_2 = arith.constant 0 : index
    %1 = vector.load %arg1[%c0_1, %c0_2] : memref<64x256xbf16, #tpu.memory_space<vmem>>, vector<64x256xbf16>
    %cst = arith.constant dense<0.000000e+00> : vector<16x256xf32>
    %2 = tpu.matmul %0, %1, %cst {dimension_numbers = #tpu.dot_dimension_numbers<[1], [0], [0], [1], [0, 0, 1, 1], [], []>} : vector<16x64xbf16>, vector<64x256xbf16>, vector<16x256xf32> -> vector<16x256xf32>
    %c0_3 = arith.constant 0 : index
    %c0_4 = arith.constant 0 : index
    %3 = vector.load %arg5[%c0_3, %c0_4] : memref<16x256xf32, #tpu.memory_space<vmem>>, vector<16x256xf32>
    tpu.vector_store %arg5[%c0_3, %c0_4], %2 {strides = array<i32>} : memref<16x256xf32, #tpu.memory_space<vmem>>, vector<16x256xf32>,
    %4 = tpu.iota {dimensions = array<i32: 0>} : vector<16x1xi32>
    %cst_5 = arith.constant 0.000000e+00 : f32
    %5 = vector.broadcast %cst_5 : f32 to vector<1x256xf32>
    %cst_6 = arith.constant 0.000000e+00 : f32
    %6 = vector.broadcast %cst_6 : f32 to vector<1x256xf32>
    %c0_i32 = arith.constant 0 : i32
    %c16_i32 = arith.constant 16 : i32
    %7 = arith.muli %c0_i32, %c16_i32 : i32
    %8 = tpu.assume_multiple %7, 16 : i32
    %9 = arith.index_cast %8 : i32 to index
    %c0_7 = arith.constant 0 : index
    %10 = vector.load %arg5[%9, %c0_7] : memref<16x256xf32, #tpu.memory_space<vmem>>, vector<16x256xf32>
    %11 = arith.index_cast %c0_i32 : i32 to index
    %c0_8 = arith.constant 0 : index
    %c0_9 = arith.constant 0 : index
    %12 = vector.load %arg3[%11, %c0_8, %c0_9] : memref<1x1x256xi32, #tpu.memory_space<vmem>>, vector<1x1x256xi32>
    %13 = vector.shape_cast %12 : vector<1x1x256xi32> to vector<1x256xi32>
    %cst_10 = arith.constant dense<0xFF800000> : vector<256xf32>
    %14 = vector.multi_reduction <maximumf>, %10, %cst_10 [0] : vector<16x256xf32> to vector<256xf32>
    %15 = vector.shape_cast %14 : vector<256xf32> to vector<1x256xf32>
    %16 = vector.broadcast %15 : vector<1x256xf32> to vector<16x256xf32>
    %17 = arith.subf %10, %16 : vector<16x256xf32>
    %18 = math.exp %17 : vector<16x256xf32>
    %cst_11 = arith.constant dense<0.000000e+00> : vector<256xf32>
    %19 = vector.multi_reduction <add>, %18, %cst_11 [0] : vector<16x256xf32> to vector<256xf32>
    %20 = vector.shape_cast %19 : vector<256xf32> to vector<1x256xf32>
    %21 = math.log %20 : vector<1x256xf32>
    %22 = arith.addf %15, %21 : vector<1x256xf32>
    %23 = vector.broadcast %13 : vector<1x256xi32> to vector<16x256xi32>
    %24 = vector.broadcast %4 : vector<16x1xi32> to vector<16x256xi32>
    %25 = arith.cmpi eq, %23, %24 : vector<16x256xi32>
    %cst_12 = arith.constant 0.000000e+00 : f32
    %26 = vector.broadcast %cst_12 : f32 to vector<16x256xf32>
    %27 = arith.select %25, %10, %26 : vector<16x256xi1>, vector<16x256xf32>
    %cst_13 = arith.constant dense<0.000000e+00> : vector<256xf32>
    %28 = vector.multi_reduction <add>, %27, %cst_13 [0] : vector<16x256xf32> to vector<256xf32>
    %29 = vector.shape_cast %28 : vector<256xf32> to vector<1x256xf32>
    %c255_i32 = arith.constant 255 : i32
    %30 = vector.broadcast %c255_i32 : i32 to vector<1x256xi32>
    %31 = arith.cmpi ne, %13, %30 : vector<1x256xi32>
    %32 = arith.extui %31 : vector<1x256xi1> to vector<1x256xi32>
    %33 = arith.sitofp %32 : vector<1x256xi32> to vector<1x256xf32>
    %34 = arith.subf %22, %29 : vector<1x256xf32>
    %35 = arith.mulf %33, %34 : vector<1x256xf32>
    %36 = arith.addf %5, %35 : vector<1x256xf32>
    %37 = arith.addf %6, %33 : vector<1x256xf32>
    %c1_i32 = arith.constant 1 : i32
    %38 = vector.shape_cast %36 : vector<1x256xf32> to vector<1x1x256xf32>
    %cst_14 = arith.constant dense<0.000000e+00> : vector<1xf32>
    %39 = vector.multi_reduction <add>, %38, %cst_14 [1, 2] : vector<1x1x256xf32> to vector<1xf32>
    %40 = vector.shape_cast %39 : vector<1xf32> to vector<1x1x1xf32>
    %41 = vector.extract %40[0, 0, 0] : f32 from vector<1x1x1xf32>
    %42 = vector.broadcast %41 : f32 to vector<1x1xf32>
    %43 = vector.shape_cast %37 : vector<1x256xf32> to vector<1x1x256xf32>
    %cst_15 = arith.constant dense<0.000000e+00> : vector<1xf32>
    %44 = vector.multi_reduction <add>, %43, %cst_15 [1, 2] : vector<1x1x256xf32> to vector<1xf32>
    %45 = vector.shape_cast %44 : vector<1xf32> to vector<1x1x1xf32>
    %46 = vector.extract %45[0, 0, 0] : f32 from vector<1x1x1xf32>
    %47 = vector.broadcast %46 : f32 to vector<1x1xf32>
    %48 = tpu.concatenate %42, %47 in 1 : vector<1x1xf32>, vector<1x1xf32> -> vector<1x2xf32>
    %c0_16 = arith.constant 0 : index
    %c0_17 = arith.constant 0 : index
    %c0_18 = arith.constant 0 : index
    %49 = vector.load %arg4[%c0_16, %c0_17, %c0_18] : memref<1x1x2xf32, #tpu.memory_space<vmem>>, vector<1x1x2xf32>
    %50 = vector.shape_cast %49 : vector<1x1x2xf32> to vector<1x2xf32>
    %51 = vector.shape_cast %48 : vector<1x2xf32> to vector<1x1x2xf32>
    tpu.vector_store %arg4[%c0_16, %c0_17, %c0_18], %51 {strides = array<i32>} : memref<1x1x2xf32, #tpu.memory_space<vmem>>, vector<1x1x2xf32>,
    return
  }
  func.func @transform_0(%arg0: i32) -> (i32, i32) {
    %c0_i32 = arith.constant 0 : i32
    %c0_i32_0 = arith.constant 0 : i32
    %c0_i32_1 = arith.constant 0 : i32
    return %c0_i32, %c0_i32_0 : i32, i32
  }
  func.func @transform_1(%arg0: i32) -> (i32, i32) {
    %c0_i32 = arith.constant 0 : i32
    %c0_i32_0 = arith.constant 0 : i32
    return %arg0, %c0_i32 : i32, i32
  }
  func.func @transform_2(%arg0: i32) -> (i32, i32, i32) {
    %c0_i32 = arith.constant 0 : i32
    %c0_i32_0 = arith.constant 0 : i32
    %c0_i32_1 = arith.constant 0 : i32
    return %arg0, %c0_i32, %c0_i32_0 : i32, i32, i32
  }
  func.func @transform_3(%arg0: i32) -> (i32, i32, i32) {
    %c0_i32 = arith.constant 0 : i32
    %c0_i32_0 = arith.constant 0 : i32
    %c0_i32_1 = arith.constant 0 : i32
    return %arg0, %c0_i32, %c0_i32_0 : i32, i32, i32
  }
}

</mosaic_0001>

<bundles_post_ra>
// kernel: tpu_custom_call.1
= control target key start
LH: loop header
LB: loop body
LE: loop exit
PB: predicated region body
PF: predicated region fallthrough
CT: control target
= control target key end

     0   :  { %8 = vsyncpa [#allocation4], 0  ;;  %s1104_s0 = inlined_call_operand.hbm [shape: bf16[64,256], index: 0, kind: input, shape index: {}]   ;;  %s1105_s1 = inlined_call_operand.hbm [shape: bf16[32,64], index: 1, kind: input, shape index: {}]   ;;  %s1106_s2 = inlined_call_operand.vmem [shape: s32[2,1,256], index: 2, kind: input, shape index: {}]   ;;  %s1107_s3 = inlined_call_operand.hbm [shape: f32[2,1,2], index: 3, kind: output, shape index: {}]  }
   0x1   :  { %9 = vsyncpa [#allocation7], 0 }
   0x2   :  { %11 = vsyncpa [#allocation7 + $0x1], 0 }
   0x3   :  { %12 = vsyncpa [#allocation5], 0 }
   0x4   :  { %14 = vsyncpa [#allocation5 + $0x1], 0  ;;  %s876_s12 = smov 0   ;;  %s878_s13 = smov 0  }
   0x5   :  { %s880_s14 = smov 0   ;;  %s882_s15 = smov 0  }
   0x6 LB: > { %s897_s16 = sadd.s32 4294967295, %s844_s15   ;;  %s597_s17 = sadd.s32 4294967294, %s844_s15   ;;  %s844_s15 = sphi %s882_s15, %s1127_s15   ;;  %s840_s14 = sphi %s880_s14, %s1126_s14   ;;  %s836_s13 = sphi %s878_s13, %s1125_s13   ;;  %s832_s12 = sphi %s876_s12, %s1124_s12  }
   0x7   : > { %p61_p0 = scmp.ne.s32.totalorder %s836_s13, %s832_s12  ;;  %p1108_p1 = scmp.eq.s32.totalorder %s897_s16, 0 }
   0x8   : > { %p117_p3 = scmp.eq.s32.totalorder %s597_s17, 1  ;;  %p598_p5 = scmp.ge.s32.totalorder %s844_s15, 1 }
   0x9   : > { %p906_p4 = por %p1108_p1, %p61_p0  ;;  %p124_p7 = scmp.lt.s32.totalorder %s844_s15, 3 }
   0xa   : > { %p911_p6 = por %p117_p3, %p61_p0  ;;  %s846_s21 = smov [#allocation3]  }
   0xb   : > { %s1111_s18 = scalar_select %p906_p4, 1, 0 }
   0xc   : > { %s1112_s19 = scalar_select %p911_p6, 1, 0 }
   0xd   : > { %p916_p8 = pnand %p598_p5, %p124_p7  ;;  %s136_s22 = sshll.u32 %s846_s21, 4  ;;  %s920_s22 = int_to_ptr.vmem [resolvable:$true] %s136_s22 }
   0xe   : > { %s932_s24 = sadd.s32 1, %s844_s15   ;;  %s48_s25 = sadd.s32 1, %s840_s14 }
   0xf   : > { %s1113_s20 = scalar_select %p916_p8, 1, 0 }
  0x10   : > { %p635_p9 = pneg %p916_p8  ;;  %s45_s26 = ssub.s32 %s844_s15, %s932_s24 }
  0x11   : > { %s716_s29 = scalar_lea.hbm %s1104_s0, 1024 }
  0x12   : > { %p927_p11 = pnand %p635_p9, %p1108_p1  ;;  %p717_p12 = scmp.ne.s32.totalorder %s1104_s0, %s716_s29 }
  0x13   : > { %p723_p5 = scmp.lt.u32.totalorder %s716_s29, %s1104_s0 }
  0x14   : > { %p718_p13 = pneg %p927_p11 }
  0x16   : > { %p719_p0 = pnand %p718_p13, %p717_p12 }
  0x18   : > { %p720_p3 = pneg %p719_p0 }
  0x1a   : > { %p725_p7 = pnand %p723_p5, %p720_p3 }
  0x1c   : > { %728 = shalt.err (!%p725_p7)
}
  0x1d   : > { %s729_s7 = scalar_lea.vmem %s920_s22, 1024  ;;  %p737_p2 = scmp.lt.s32.totalorder %s920_s22, %s920_s22 }
  0x1e   : > { %p730_p9 = scmp.ne.s32.totalorder %s920_s22, %s729_s7  ;;  %p738_p6 = scmp.lt.s32.totalorder %s729_s7, %s729_s7 }
  0x20   : > { %p732_p10 = pnand %p730_p9, %p718_p13  ;;  %p739_p4 = por %p738_p6, %p737_p2 }
  0x22   : > { %p733_p1 = pneg %p732_p10 }
  0x24   : > { %p740_p8 = pnand %p739_p4, %p733_p1 }
  0x26   : > { %743 = shalt.err (!%p740_p8)
}
  0x27   : > { %s847_s8 = smov 128   ;;  %s848_s9 = smov 8  }
  0x28   : > { %638 = dma.hbm_to_vmem [thread:$0]  (!%p927_p11), %s1104_s0, 1024, %s920_s22, [#allocation4], %s847_s8, %s847_s8, %s848_s9  }
  0x29   : > { %p46_p2 = scmp.eq.s32.totalorder %s45_s26, 0  ;;  %p55_p1 = scmp.ne.s32.totalorder %s840_s14, %s836_s13 }
  0x2a   : > { %p56_p4 = scmp.eq.s32.totalorder %s844_s15, 0  ;;  %p648_p6 = scmp.lt.s32.totalorder %s844_s15, 2 }
  0x2b   : > { %s963_s17 = scalar_select %p46_p2, %s840_s14, %s48_s25  }
  0x2c   : > { %p57_p8 = por %p56_p4, %p55_p1  ;;  %p1115_p10 = scmp.eq.s32.totalorder %s897_s16, 1 }
  0x2d   : > { %s150_s27 = sand.u32 1, %s840_s14   ;;  %s622_s28 = sshll.u32 %s844_s15, 7 }
  0x2e   : > { %p967_p12 = por %p1115_p10, %p55_p1  ;;  %s601_s29 = sshll.u32 %s150_s27, 3 }
  0x2f   : > { %s976_s4 = scalar_lea.hbm %s1105_s1, %s622_s28  ;;  %s154_s22 = scalar_lea.vmem [#allocation6], %s601_s29 }
  0x30   : > { %s161_s25 = sshll.u32 %s154_s22, 4  ;;  %p978_p11 = pnand %p648_p6, %p57_p8  ;;  %s982_s25 = int_to_ptr.vmem [resolvable:$true] %s161_s25 }
  0x31   : > { %s984_s5 = scalar_lea.sflag [#allocation7], %s150_s27  ;;  %s744_s6 = scalar_lea.hbm %s976_s4, 128 }
  0x32   : > { %p745_p13 = scmp.ne.s32.totalorder %s976_s4, %s744_s6  ;;  %p746_p0 = pneg %p978_p11 }
  0x33   : > { %s749_s9 = scalar_lea.hbm %s1105_s1, 256  ;;  %p750_p7 = scmp.lt.u32.totalorder %s976_s4, %s1105_s1 }
  0x34   : > { %p747_p3 = pnand %p746_p0, %p745_p13  ;;  %p751_p9 = scmp.lt.u32.totalorder %s749_s9, %s744_s6 }
  0x35   : > { %p753_p1 = scmp.lt.u32.totalorder %s744_s6, %s976_s4 }
  0x36   : > { %p748_p5 = pneg %p747_p3  ;;  %p752_p2 = por %p751_p9, %p750_p7 }
  0x38   : > { %p754_p4 = por %p753_p1, %p752_p2 }
  0x3a   : > { %p755_p6 = pnand %p754_p4, %p748_p5 }
  0x3c   : > { %758 = shalt.err (!%p755_p6)
}
  0x3d   : > { %s759_s27 = scalar_lea.vmem %s982_s25, 128  ;;  %s849_s28 = smov [#allocation6]  }
  0x3e   : > { %p760_p8 = scmp.ne.s32.totalorder %s982_s25, %s759_s27  ;;  %s764_s29 = sshll.u32 %s849_s28, 4  ;;  %s765_s29 = int_to_ptr.vmem [resolvable:$false] %s764_s29 }
  0x3f   : > { %s766_s23 = scalar_lea.vmem %s765_s29, 256  ;;  %p767_p3 = scmp.lt.s32.totalorder %s982_s25, %s765_s29 }
  0x40   : > { %p762_p10 = pnand %p760_p8, %p746_p0  ;;  %p768_p7 = scmp.lt.s32.totalorder %s766_s23, %s759_s27 }
  0x42   : > { %p763_p13 = pneg %p762_p10  ;;  %p769_p9 = por %p768_p7, %p767_p3 }
  0x44   : > { %p770_p2 = pnand %p769_p9, %p763_p13 }
  0x46   : > { %773 = shalt.err (!%p770_p2)
}
  0x47   : > { %s850_s30 = smov 64   ;;  %s851_s22 = smov 4  }
  0x48   : > { %642 = dma.hbm_to_vmem [thread:$0]  (!%p978_p11), %s976_s4, 128, %s982_s25, %s984_s5, %s850_s30, %s850_s30, %s851_s22  }
  0x49   : > { %p1118_p0 = scmp.ne.s32.totalorder %s1113_s20, 0 }
  0x4a   : > { %p1119_p5 = scmp.eq.s32.totalorder (!%p1118_p0), %s897_s16, 0 }
  0x4b   : > { %180 = sbr.rel (%p1118_p0) target bundleno = 618 (0x26a), region = 32 }
  0x52   : > { %819 = dma.done.wait (%p1119_p5), [#allocation4], 1024   ;;  %p1120_p1 = pmov %p1119_p5 }
  0x53   : > { %s1019_s6 = sand.u32 1, %s836_s13   ;;  %p1121_p4 = scmp.ne.s32.totalorder %s1111_s18, 0 }
  0x54   : > { %821 = vsyncadd (%p1120_p1), [#allocation4], 4294966272  ;;  %s606_s7 = sshll.u32 %s1019_s6, 3  ;;  %s187_s8 = scalar_lea.sflag [#allocation7], %s1019_s6 }
  0x55   : > { %s190_s9 = scalar_lea.vmem [#allocation6], %s606_s7 }
  0x56   : > { %823 = dma.done.wait (%p1121_p4), %s187_s8, 128  }
  0x57   : > { %825 = vsyncadd (%p1121_p4), %s187_s8, 4294967168  ;;  %v852_v0 = vmov 0   ;;  %v691_v1 = vld [vmem:[#allocation3 + $0x4] ss:$8 sps:$4 sm:$0xff]   ;;  %v693_v2 = vld [vmem:[#allocation3] ss:$8 sps:$4 sm:$0xff]   ;;  %v328_v10 = vlaneseq }
  0x58   : > { %313 = vmatprep.mubr.bf16.mxu0 %v852_v0  ;;  %281 = vmatprep.subr.bf16.mxu0 %v691_v1  ;;  %v694_v3 = vld [vmem:[#allocation3 + $0x14] ss:$8 sps:$4 sm:$0xff]   ;;  %v696_v4 = vld [vmem:[#allocation3 + $0x10] ss:$8 sps:$4 sm:$0xff]   ;;  %v697_v5 = vld [vmem:[#allocation3 + $0x24] ss:$8 sps:$4 sm:$0xff]  }
  0x59   : > { %282 = vmatpush1.bf16.msra.mxu0 %v693_v2  ;;  %v699_v6 = vld [vmem:[#allocation3 + $0x20] ss:$8 sps:$4 sm:$0xff]   ;;  %v700_v7 = vld [vmem:[#allocation3 + $0x34] ss:$8 sps:$4 sm:$0xff]   ;;  %v702_v8 = vld [vmem:[#allocation3 + $0x30] ss:$8 sps:$4 sm:$0xff]  }
  0x5a   : > { %283 = vmatprep.subr.bf16.mxu0 %v694_v3  ;;  %v703_v9 = vld [vmem:[%s190_s9] sm:$0xff]   ;;  %vm277_vm0 = vcmask 523264   ;;  %p217_p11 = scmp.lt.s32.totalorder %s897_s16, 1  ;;  %v1029_v11 = vshrl.u32 %v328_v10, 7  ;;  %vm452_vm6 = vcmask 1040384   ;;  %s619_s5 = sshll.u32 %s897_s16, 4 }
  0x5b   : > { %s215_s11 = scalar_lea.vmem [#allocation8], %s1019_s6  ;;  %vm490_vm7 = vcmask 7168   ;;  %vm492_vm8 = vcmask 8192   ;;  %s1060_s30 = scalar_lea.hbm %s1107_s3, %s619_s5 }
  0x5c   : > { %s218_s18 = scalar_select %p217_p11, %s897_s16, 1  ;;  %v1035_v12 = vsub.s32 0, %v1029_v11  ;;  %v1040_v14 = vsub.s32 1, %v1029_v11  ;;  %v330_v16 = vadd.s32 8, %v1029_v11 }
  0x5d   : > { %284 = vmatpush1.bf16.msra.mxu0 %v696_v4  ;;  %s507_s27 = sshll.u32 %s215_s11, 4  ;;  %s495_s16 = scalar_lea.sflag [#allocation5], %s1019_s6  ;;  %s1062_s27 = int_to_ptr.vmem [resolvable:$true] %s507_s27 }
  0x5e   : > { %285 = vmatprep.subr.bf16.mxu0 %v697_v5  ;;  %s607_s20 = sshll.u32 %s218_s18, 1  ;;  %s774_s22 = scalar_lea.vmem %s1062_s27, 16 }
  0x5f   : > { %s220_s26 = scalar_lea.vmem %s1106_s2, %s607_s20  ;;  %p775_p6 = scmp.ne.s32.totalorder %s1062_s27, %s774_s22 }
  0x60   : > { %v1037_v13 = vld [vmem:[%s220_s26] sm:$0x3]  ;;  %s855_s7 = smov [#allocation8]  }
  0x61   : > { %286 = vmatpush1.bf16.msra.mxu0 %v699_v6  ;;  %v388_v15 = vrot.slane %v1037_v13, %v1035_v12  ;;  %v392_v17 = vrot.slane %v1037_v13, %v1040_v14  ;;  %vm415_vm5 = vcmp.ne.s32.totalorder %v1037_v13, 255  ;;  %p776_p8 = pnand %p775_p6, %p967_p12  ;;  %s778_s8 = sshll.u32 %s855_s7, 4  ;;  %s779_s8 = int_to_ptr.vmem [resolvable:$false] %s778_s8 }
  0x62   : > { %287 = vmatprep.subr.bf16.mxu0 %v700_v7  ;;  %s780_s9 = scalar_lea.vmem %s779_s8, 32  ;;  %p781_p13 = scmp.lt.s32.totalorder %s1062_s27, %s779_s8 }
  0x63   : > { %vm393_vm1 = vcmp.eq.s32.totalorder %v388_v15, %v1029_v11  ;;  %vm395_vm2 = vcmp.eq.s32.totalorder %v388_v15, %v330_v16  ;;  %vm394_vm3 = vcmp.eq.s32.totalorder %v392_v17, %v1029_v11  ;;  %vm396_vm4 = vcmp.eq.s32.totalorder %v392_v17, %v330_v16  ;;  %p777_p10 = pneg %p776_p8  ;;  %p782_p3 = scmp.lt.s32.totalorder %s780_s9, %s774_s22 }
  0x64   : > { %v853_v17 = vmov 1966171168  }
  0x65   : > { %288 = vmatpush1.bf16.msra.mxu0 %v702_v8  ;;  %p783_p7 = por %p782_p3, %p781_p13 }
  0x67   : > { %p784_p9 = pnand %p783_p7, %p777_p10 }
  0x68   : > { %617 = vmatmul.mubr.msk.bf16.vlgmr.msra.gmra.mrb[0].mxu0 %vm277_vm0, %v703_v9 }
 0x13b   : > { %v315_v18 = vpop.f32.mrb[0].mxu0 }
 0x13c   : > { %v317_v19 = vpop.f32.mrb[1].mxu0  ;;  %v397_v21 = vsel %vm393_vm1, %v315_v18, 0.0 }
 0x13d   : > { %v319_v20 = vpop.f32.mrb[2].mxu0  ;;  %v398_v25 = vsel %vm394_vm3, %v317_v19, 0.0 }
 0x13e   : > { %v339_v22 = vmax.f32 %v315_v18, %v319_v20  ;;  %v399_v23 = vsel %vm395_vm2, %v319_v20, 0.0  ;;  %v321_v24 = vpop.f32.mrb[3].mxu0 }
 0x13f   : > { %v401_v26 = vadd.f32 %v399_v23, %v397_v21  ;;  %v346_v27 = vmax.f32 %v317_v19, %v321_v24  ;;  %v400_v28 = vsel %vm396_vm4, %v321_v24, 0.0 }
 0x140   : > { %v340_v29 = vrot.slane %v339_v22, 4  ;;  %v408_v30 = vadd.f32 %v400_v28, %v398_v25 }
 0x141   : > { %v347_v31 = vrot.slane %v346_v27, 4  ;;  %v402_v61 = vrot.slane %v401_v26, 4 }
 0x142   : > { %v341_v32 = vmax.f32 %v339_v22, %v340_v29  ;;  %v409_v0 = vrot.slane %v408_v30, 4 }
 0x143   : > { %v348_v33 = vmax.f32 %v346_v27, %v347_v31  ;;  %v403_v3 = vadd.f32 %v402_v61, %v401_v26 }
 0x144   : > { %v342_v34 = vrot.slane %v341_v32, 2  ;;  %v410_v6 = vadd.f32 %v409_v0, %v408_v30 }
 0x145   : > { %v349_v35 = vrot.slane %v348_v33, 2  ;;  %v404_v8 = vrot.slane %v403_v3, 2 }
 0x146   : > { %v343_v36 = vmax.f32 %v341_v32, %v342_v34  ;;  %v411_v9 = vrot.slane %v410_v6, 2  ;;  %v854_v34 = vmov 0.0  }
 0x147   : > { %v350_v37 = vmax.f32 %v348_v33, %v349_v35  ;;  %v405_v10 = vadd.f32 %v404_v8, %v403_v3  ;;  %v618_v35 = vsel %vm415_vm5, 1.0, %v854_v34 }
 0x148   : > { %v344_v38 = vrot.slane %v343_v36, 1  ;;  %v412_v15 = vadd.f32 %v411_v9, %v410_v6 }
 0x149   : > { %v351_v39 = vrot.slane %v350_v37, 1  ;;  %v406_v16 = vrot.slane %v405_v10, 1 }
 0x14a   : > { %v345_v40 = vmax.f32 %v343_v36, %v344_v38  ;;  %v413_v21 = vrot.slane %v412_v15, 1  ;;  %v470_v38 = vrot.slane %v618_v35, %v1035_v12 }
 0x14b   : > { %v352_v41 = vmax.f32 %v350_v37, %v351_v39  ;;  %v474_v39 = vrot.slane %v618_v35, %v1040_v14 }
 0x14c   : > { %v353_v42 = vsub.f32 %v315_v18, %v345_v40  ;;  %v355_v43 = vsub.f32 %v319_v20, %v345_v40  ;;  %v424_v18 = vunpack.c.l.s4 %v853_v17  ;;  %v414_v29 = vadd.f32 %v413_v21, %v412_v15 }
 0x14d   : > { %v354_v44 = vsub.f32 %v317_v19, %v352_v41  ;;  %v356_v45 = vsub.f32 %v321_v24, %v352_v41  ;;  %v407_v24 = vadd.f32 %v406_v16, %v405_v10 }
 0x14e   : > { %v357_v46 = vmul.f32 1.442695, %v353_v42  ;;  %v361_v47 = vmul.f32 1.442695, %v355_v43  ;;  %v425_v26 = vunpack.c.0.s8 %v424_v18 }
 0x14f   : > { %v359_v48 = vmul.f32 1.442695, %v354_v44  ;;  %v363_v49 = vmul.f32 1.442695, %v356_v45  ;;  %v478_v44 = vsel %vm452_vm6, %v474_v39, 0.0 }
 0x150   : > { %704 = vpow2.f32 %v357_v46  ;;  %v428_v31 = vsub.s32 %v425_v26, %v1029_v11  ;;  %v477_v11 = vsel %vm452_vm6, %v470_v38, 0.0 }
 0x151   : > { %706 = vpow2.f32 %v361_v47  ;;  %v479_v45 = vadd.f32 %v478_v44, %v477_v11 }
 0x152   : > { %708 = vpow2.f32 %v359_v48 }
 0x153   : > { %710 = vpow2.f32 %v363_v49 }
 0x15a   : > { %v705_v50 = vpop.eup %704 }
 0x15b   : > { %v707_v51 = vpop.eup %706 }
 0x15c   : > { %v709_v52 = vpop.eup %708  ;;  %v365_v53 = vadd.f32 %v707_v51, %v705_v50 }
 0x15d   : > { %v711_v54 = vpop.eup %710 }
 0x15e   : > { %v366_v55 = vrot.slane %v365_v53, 4  ;;  %v372_v56 = vadd.f32 %v711_v54, %v709_v52 }
 0x160   : > { %v367_v57 = vadd.f32 %v366_v55, %v365_v53  ;;  %v373_v58 = vrot.slane %v372_v56, 4 }
 0x162   : > { %v368_v59 = vrot.slane %v367_v57, 2  ;;  %v374_v60 = vadd.f32 %v373_v58, %v372_v56 }
 0x164   : > { %v369_v62 = vadd.f32 %v368_v59, %v367_v57  ;;  %v375_v63 = vrot.slane %v374_v60, 2 }
 0x166   : > { %v370_v1 = vrot.slane %v369_v62, 1  ;;  %v376_v2 = vadd.f32 %v375_v63, %v374_v60 }
 0x168   : > { %v371_v4 = vadd.f32 %v370_v1, %v369_v62  ;;  %v377_v5 = vrot.slane %v376_v2, 1 }
 0x16a   : > { %712 = vlog2.f32 %v371_v4  ;;  %v378_v7 = vadd.f32 %v377_v5, %v376_v2 }
 0x16c   : > { %714 = vlog2.f32 %v378_v7 }
 0x174   : > { %v713_v19 = vpop.eup %712 }
 0x175   : > { %v380_v20 = vmul.f32 0.6931472, %v713_v19 }
 0x176   : > { %v715_v22 = vpop.eup %714 }
 0x177   : > { %v383_v23 = vadd.f32 %v380_v20, %v345_v40  ;;  %v382_v25 = vmul.f32 0.6931472, %v715_v22 }
 0x179   : > { %v418_v27 = vsub.f32 %v383_v23, %v407_v24  ;;  %v384_v28 = vadd.f32 %v382_v25, %v352_v41 }
 0x17b   : > { %v419_v30 = vsub.f32 %v384_v28, %v414_v29 }
 0x17d   : > { %v422_v32 = vcombine.low %v418_v27, %v419_v30 }
 0x17f   : > { %v429_v33 = vrot.slane %v422_v32, %v428_v31 }
 0x181   : > { %v436_v36 = vrot.slane %v429_v33, %v428_v31 }
 0x183   : > { %v438_v37 = vmul.f32 %v618_v35, %v436_v36 }
 0x185   : > { %v445_v40 = vrot.slane %v438_v37, %v1035_v12  ;;  %v449_v41 = vrot.slane %v438_v37, %v1040_v14 }
 0x187   : > { %v453_v42 = vsel %vm452_vm6, %v445_v40, 0.0  ;;  %v454_v43 = vsel %vm452_vm6, %v449_v41, 0.0 }
 0x188   : > { %v455_v13 = vadd.f32 %v454_v43, %v453_v42 }
 0x18a   : > { %456 = vadd.xlane.f32.xlu0 %v455_v13 }
 0x18e   : > { %480 = vadd.xlane.f32.xlu0 %v479_v45 }
 0x217   : > { %v457_v46 = vpop.xlane.xlu0 %456 }
 0x218   : > { %v458_v47 = vrot.slane %v457_v46, 4 }
 0x21a   : > { %v459_v48 = vadd.f32 %v458_v47, %v457_v46 }
 0x21b   : > { %v481_v49 = vpop.xlane.xlu0 %480 }
 0x21c   : > { %v460_v50 = vrot.slane %v459_v48, 2  ;;  %v482_v51 = vrot.slane %v481_v49, 4 }
 0x21e   : > { %v483_v52 = vadd.f32 %v482_v51, %v481_v49  ;;  %v461_v12 = vadd.f32 %v460_v50, %v459_v48 }
 0x220   : > { %v484_v53 = vrot.slane %v483_v52, 2  ;;  %v462_v14 = vrot.slane %v461_v12, 1 }
 0x222   : > { %v485_v54 = vadd.f32 %v484_v53, %v483_v52  ;;  %v463_v55 = vadd.f32 %v462_v14, %v461_v12 }
 0x224   : > { %623 = vpush %v463_v55  ;;  %v486_v56 = vrot.slane %v485_v54, 1 }
 0x226   : > { %v487_v57 = vadd.f32 %v486_v56, %v485_v54 }
 0x228   : > { %625 = vpush %v487_v57 }
 0x255   : > { %s624_s10 = spop %623 }
 0x256   : > { %v465_v58 = vstv %s624_s10 }
 0x259   : > { %s626_s28 = spop %625 }
 0x25a   : > { %v489_v59 = vstv %s626_s28 }
 0x25b   : > { %v491_v60 = vsel %vm490_vm7, %v465_v58, %v489_v59 }
 0x25c   : > { %493 = vst.msk [vmem:[%s215_s11] sm:$0x1] %vm492_vm8, %v491_v60 }
 0x25d   : > { %787 = shalt.err (!%p784_p9)
}
 0x25e   : > { %s788_s6 = scalar_lea.hbm %s1060_s30, 16  ;;  %s792_s4 = scalar_lea.hbm %s1107_s3, 32 }
 0x25f   : > { %p789_p2 = scmp.ne.s32.totalorder %s1060_s30, %s788_s6  ;;  %p793_p1 = scmp.lt.u32.totalorder %s1060_s30, %s1107_s3 }
 0x260   : > { %p794_p4 = scmp.lt.u32.totalorder %s792_s4, %s788_s6  ;;  %p796_p6 = scmp.lt.u32.totalorder %s788_s6, %s1060_s30 }
 0x261   : > { %p790_p0 = pnand %p789_p2, %p967_p12 }
 0x262   : > { %p795_p11 = por %p794_p4, %p793_p1 }
 0x263   : > { %p791_p5 = pneg %p790_p0 }
 0x264   : > { %p797_p8 = por %p796_p6, %p795_p11 }
 0x266   : > { %p798_p10 = pnand %p797_p8, %p791_p5 }
 0x268   : > { %801 = shalt.err (!%p798_p10)
}
 0x269   : > { %633 = dma.vmem_to_hbm [thread:$0]  (%p967_p12), %s1062_s27, 16, %s1060_s30, %s495_s16  }
 0x26a PF: > { %s519_s5 = sand.u32 1, %s832_s12   ;;  %p1122_p13 = scmp.ne.s32.totalorder %s1112_s19, 0 }
 0x26b   : > { %p1123_p3 = scmp.ge.s32.totalorder %s844_s15, 2  ;;  %s520_s10 = scalar_lea.sflag [#allocation5], %s519_s5 }
 0x26d   : > { %p644_p7 = pnand %p1123_p3, %p1122_p13 }
 0x26f   : > { %827 = dma.done.wait (!%p644_p7), %s520_s10, 16  }
 0x270   : > { %829 = vsyncadd (!%p644_p7), %s520_s10, 4294967280  ;;  %p17_p9 = scmp.ge.s32.totalorder %s932_s24, 4   ;;  %s1124_s12 = smov %s836_s13 }
 0x271   : > { %s1125_s13 = smov %s840_s14  ;;  %s1126_s14 = smov %s963_s17 }
 0x272   : > { %s1127_s15 = smov %s932_s24  ;;  %19 = sbr.rel (!%p17_p9) target bundleno = 6 (0x6), region = 86 }
 0x279   :  { %524 = vsyncpa [#allocation4], 1 }
 0x27a   :  { %526 = vsyncpa [#allocation4 + $0x1], 1 }
 0x27b   :  { %527 = vsyncpa [#allocation7], 1 }
 0x27c   :  { %529 = vsyncpa [#allocation7 + $0x1], 1 }
 0x27d   :  { %530 = vsyncpa [#allocation5], 1 }
 0x27e   :  { %532 = vsyncpa [#allocation5 + $0x1], 1 }

</bundles_post_ra>
